<compile_context>
chip_gen: v7x
topology: tpu7x:2x2x1
jax: 0.10.0
libtpu: 0.0.40
codegen_flags: <defaults>
</compile_context>

<pallas_src>
import functools

import jax
import jax.numpy as jnp
from jax.experimental import pallas as pl
from jax.experimental.pallas import tpu as pltpu

LANES = 128
SUBLANES = 8
MAX_BLOCK_ROWS = 1024   # (1024, 128) f32 tile = 512 KiB per input per buffer
MAX_SHARDS = 2          # "parallel" leading axis: 2 TCs on v7x, no-op elsewhere


def _round_up(x, m):
    return (x + m - 1) // m * m


def _cdiv(a, b):
    return (a + b - 1) // b


def _tversky_partials_kernel(x_ref, t_ref, o_ref, tp_acc, sx_acc, st_acc, *,
                             steps, num_tiles, block_rows, valid_rows,
                             need_tile_guard, need_row_mask):
    s = pl.program_id(0)   # shard (parallel)
    k = pl.program_id(1)   # reduction step (arbitrary)

    @pl.when(k == 0)
    def _init():
        tp_acc[...] = jnp.zeros_like(tp_acc)
        sx_acc[...] = jnp.zeros_like(sx_acc)
        st_acc[...] = jnp.zeros_like(st_acc)

    tile_idx = s * steps + k   # logical (unclamped) tile index

    def _accumulate():
        x = x_ref[...].astype(jnp.float32)
        t = t_ref[...].astype(jnp.float32)
        if need_row_mask:
            # Mask rows of the partial last tile. Cheap VPU filler; the kernel
            # stays HBM-bound. Masking before the multiply also kills any
            # garbage bits from the partially-read last block.
            row = jax.lax.broadcasted_iota(jnp.int32, (block_rows, LANES), 0)
            valid = tile_idx * block_rows + row < valid_rows
            x = jnp.where(valid, x, 0.0)
            t = jnp.where(valid, t, 0.0)
        # Hot loop: pure elementwise VPU work, hides under the HBM DMA stream.
        tp_acc[...] += x * t
        sx_acc[...] += x
        st_acc[...] += t

    if need_tile_guard:
        # Clamped duplicate tiles (shard rounding) contribute exactly zero by
        # skipping the accumulation entirely.
        pl.when(tile_idx < num_tiles)(_accumulate)
    else:
        _accumulate()

    @pl.when(k == steps - 1)
    def _finalize():
        o_ref[0, 0] = jnp.sum(tp_acc[...])   # TP partial
        o_ref[0, 1] = jnp.sum(sx_acc[...])   # sum(x) partial
        o_ref[0, 2] = jnp.sum(st_acc[...])   # sum(t) partial


def tversky_loss(inputs, targets, smooth=1.0, alpha=1.0, beta=0.5):
    """Matches TverskyLoss.forward(inputs, targets, smooth, alpha, beta)."""
    x = inputs.reshape(-1)
    t = targets.reshape(-1)
    n = x.shape[0]

    # Pad to a whole (8, 128) vreg so the (rows, 128) reshape is always
    # tile-legal. Zero padding is exact for all three sums; only happens in the
    # (rare) unaligned case.
    n_pad = _round_up(n, SUBLANES * LANES)
    if n_pad != n:
        x = jnp.pad(x, (0, n_pad - n))
        t = jnp.pad(t, (0, n_pad - n))

    rows = n_pad // LANES                         # always a multiple of 8
    block_rows = min(MAX_BLOCK_ROWS, rows)        # multiple of 8
    num_tiles = _cdiv(rows, block_rows)
    num_shards = MAX_SHARDS if num_tiles >= MAX_SHARDS else 1
    steps = _cdiv(num_tiles, num_shards)
    need_tile_guard = num_shards * steps > num_tiles   # duplicated tiles exist
    need_row_mask = (rows % block_rows) != 0           # partial last tile

    x2 = x.reshape(rows, LANES)
    t2 = t.reshape(rows, LANES)

    def in_index_map(s, k):
        idx = s * steps + k
        if need_tile_guard:
            # Keep duplicated (skipped) tiles in range; they re-read the last
            # tile (read-only, contribution skipped in-kernel).
            idx = jnp.minimum(idx, num_tiles - 1)
        return (idx, 0)

    kernel = functools.partial(
        _tversky_partials_kernel,
        steps=steps, num_tiles=num_tiles, block_rows=block_rows,
        valid_rows=rows, need_tile_guard=need_tile_guard,
        need_row_mask=need_row_mask)

    partials = pl.pallas_call(
        kernel,
        out_shape=jax.ShapeDtypeStruct((num_shards, 3), jnp.float32),
        grid_spec=pltpu.PrefetchScalarGridSpec(
            num_scalar_prefetch=0,
            grid=(num_shards, steps),
            in_specs=[
                pl.BlockSpec((block_rows, LANES), in_index_map),
                pl.BlockSpec((block_rows, LANES), in_index_map),
            ],
            out_specs=pl.BlockSpec((1, 3), lambda s, k: (s, 0),
                                   memory_space=pltpu.SMEM),
            scratch_shapes=[
                pltpu.VMEM((block_rows, LANES), jnp.float32),  # TP acc
                pltpu.VMEM((block_rows, LANES), jnp.float32),  # sum(x) acc
                pltpu.VMEM((block_rows, LANES), jnp.float32),  # sum(t) acc
            ],
        ),
        compiler_params=pltpu.CompilerParams(
            dimension_semantics=("parallel", "arbitrary")),
    )(x2, t2)

    # Combine per-shard partials and apply the Tversky formula (scalar work).
    tp = jnp.sum(partials[:, 0])
    sx = jnp.sum(partials[:, 1])
    st = jnp.sum(partials[:, 2])
    fp = sx - tp            # sum((1 - t) * x)
    fn = st - tp            # sum(t * (1 - x))
    tversky = (tp + smooth) / (tp + alpha * fp + beta * fn + smooth)
    return 1.0 - tversky


def tversky_loss_ref(inputs, targets, smooth=1.0, alpha=1.0, beta=0.5):
    x = inputs.reshape(-1).astype(jnp.float32)
    t = targets.reshape(-1).astype(jnp.float32)
    tp = jnp.sum(x * t)
    fp = jnp.sum((1.0 - t) * x)
    fn = jnp.sum(t * (1.0 - x))
    tversky = (tp + smooth) / (tp + alpha * fp + beta * fn + smooth)
    return 1.0 - tversky


def _make_case(seed, shape, dtype=jnp.float32):
    k1, k2 = jax.random.split(jax.random.PRNGKey(seed))
    inputs = jax.nn.sigmoid(jax.random.normal(k1, shape, dtype=jnp.float32))
    targets = (jax.random.uniform(k2, shape) > 0.5).astype(jnp.float32)
    return inputs.astype(dtype), targets.astype(dtype)


if __name__ == "__main__":
    # TverskyLoss has no parameters; deterministic synthetic inputs only.

    # 1) Primary: small shape consistent with the module (N, C, H, W);
    #    single-tile, single-shard, no-mask path.
    inputs, targets = _make_case(0, (2, 4, 16, 16))
    loss = jax.block_until_ready(tversky_loss(inputs, targets))
    ref = tversky_loss_ref(inputs, targets)
    assert jnp.allclose(loss, ref, rtol=1e-5, atol=1e-6), (loss, ref)

    # 2) Native bf16 streaming (in-kernel cast path).
    inputs2, targets2 = _make_case(2, (2, 4, 32, 32), dtype=jnp.bfloat16)
    loss2 = jax.block_until_ready(tversky_loss(inputs2, targets2))
    ref2 = tversky_loss_ref(inputs2, targets2)
    assert jnp.allclose(loss2, ref2, rtol=1e-4, atol=1e-5), (loss2, ref2)

    # 3) Lane-unaligned size (host-side zero pad path).
    inputs3, targets3 = _make_case(3, (3, 5, 7, 11))
    loss3 = jax.block_until_ready(tversky_loss(inputs3, targets3))
    ref3 = tversky_loss_ref(inputs3, targets3)
    assert jnp.allclose(loss3, ref3, rtol=1e-5, atol=1e-6), (loss3, ref3)

    # 4) Odd tile count -> two shards + tile-guard (duplicated-tile skip) path.
    inputs4, targets4 = _make_case(4, (6, 4, 128, 128))
    loss4 = jax.block_until_ready(tversky_loss(inputs4, targets4))
    ref4 = tversky_loss_ref(inputs4, targets4)
    assert jnp.allclose(loss4, ref4, rtol=1e-4, atol=1e-5), (loss4, ref4)

    # 5) Partial last tile -> in-kernel row-mask path.
    inputs5, targets5 = _make_case(5, (3, 4, 100, 128))
    loss5 = jax.block_until_ready(tversky_loss(inputs5, targets5))
    ref5 = tversky_loss_ref(inputs5, targets5)
    assert jnp.allclose(loss5, ref5, rtol=1e-4, atol=1e-5), (loss5, ref5)

    print("KERNEL_OK")
</pallas_src>

<mosaic_0001>
module attributes {stable_mosaic.version = 11 : i64} {
  func.func @_tversky_partials_kernel(%arg0: i32, %arg1: i32, %arg2: memref<16x128xf32, #tpu.memory_space<vmem>>, %arg3: memref<16x128xf32, #tpu.memory_space<vmem>>, %arg4: memref<1x3xf32, #tpu.memory_space<smem>>, %arg5: memref<16x128xf32, #tpu.memory_space<vmem>>, %arg6: memref<16x128xf32, #tpu.memory_space<vmem>>, %arg7: memref<16x128xf32, #tpu.memory_space<vmem>>) attributes {dimension_semantics = [#tpu.dimension_semantics<parallel>, #tpu.dimension_semantics<arbitrary>], iteration_bounds = array<i64: 1, 1>, scalar_prefetch = 0 : i64, scratch_operands = 3 : i64, tpu.core_type = #tpu.core_type<tc>, window_params = [{transform_indices = @transform_0, window_bounds = array<i64: 16, 128>}, {transform_indices = @transform_1, window_bounds = array<i64: 16, 128>}, {transform_indices = @transform_2, window_bounds = array<i64: 1, 3>}]} {
    %c0_i32 = arith.constant 0 : i32
    %0 = arith.cmpi eq, %arg1, %c0_i32 : i32
    %1 = arith.extui %0 : i1 to i32
    %c0_i32_0 = arith.constant 0 : i32
    %2 = arith.cmpi ne, %1, %c0_i32_0 : i32
    scf.if %2 {
      %cst = arith.constant 0.000000e+00 : f32
      %18 = vector.broadcast %cst : f32 to vector<16x128xf32>
      %c0_18 = arith.constant 0 : index
      %c0_19 = arith.constant 0 : index
      %19 = vector.load %arg5[%c0_18, %c0_19] : memref<16x128xf32, #tpu.memory_space<vmem>>, vector<16x128xf32>
      tpu.vector_store %arg5[%c0_18, %c0_19], %18 {strides = array<i32>} : memref<16x128xf32, #tpu.memory_space<vmem>>, vector<16x128xf32>,
      %cst_20 = arith.constant 0.000000e+00 : f32
      %20 = vector.broadcast %cst_20 : f32 to vector<16x128xf32>
      %c0_21 = arith.constant 0 : index
      %c0_22 = arith.constant 0 : index
      %21 = vector.load %arg6[%c0_21, %c0_22] : memref<16x128xf32, #tpu.memory_space<vmem>>, vector<16x128xf32>
      tpu.vector_store %arg6[%c0_21, %c0_22], %20 {strides = array<i32>} : memref<16x128xf32, #tpu.memory_space<vmem>>, vector<16x128xf32>,
      %cst_23 = arith.constant 0.000000e+00 : f32
      %22 = vector.broadcast %cst_23 : f32 to vector<16x128xf32>
      %c0_24 = arith.constant 0 : index
      %c0_25 = arith.constant 0 : index
      %23 = vector.load %arg7[%c0_24, %c0_25] : memref<16x128xf32, #tpu.memory_space<vmem>>, vector<16x128xf32>
      tpu.vector_store %arg7[%c0_24, %c0_25], %22 {strides = array<i32>} : memref<16x128xf32, #tpu.memory_space<vmem>>, vector<16x128xf32>,
    } else {
    }
    %c0 = arith.constant 0 : index
    %c0_1 = arith.constant 0 : index
    %3 = vector.load %arg2[%c0, %c0_1] : memref<16x128xf32, #tpu.memory_space<vmem>>, vector<16x128xf32>
    %c0_2 = arith.constant 0 : index
    %c0_3 = arith.constant 0 : index
    %4 = vector.load %arg3[%c0_2, %c0_3] : memref<16x128xf32, #tpu.memory_space<vmem>>, vector<16x128xf32>
    %c0_4 = arith.constant 0 : index
    %c0_5 = arith.constant 0 : index
    %5 = vector.load %arg5[%c0_4, %c0_5] : memref<16x128xf32, #tpu.memory_space<vmem>>, vector<16x128xf32>
    %6 = arith.mulf %3, %4 : vector<16x128xf32>
    %7 = arith.addf %5, %6 : vector<16x128xf32>
    %c0_6 = arith.constant 0 : index
    %c0_7 = arith.constant 0 : index
    %8 = vector.load %arg5[%c0_6, %c0_7] : memref<16x128xf32, #tpu.memory_space<vmem>>, vector<16x128xf32>
    tpu.vector_store %arg5[%c0_6, %c0_7], %7 {strides = array<i32>} : memref<16x128xf32, #tpu.memory_space<vmem>>, vector<16x128xf32>,
    %c0_8 = arith.constant 0 : index
    %c0_9 = arith.constant 0 : index
    %9 = vector.load %arg6[%c0_8, %c0_9] : memref<16x128xf32, #tpu.memory_space<vmem>>, vector<16x128xf32>
    %10 = arith.addf %9, %3 : vector<16x128xf32>
    %c0_10 = arith.constant 0 : index
    %c0_11 = arith.constant 0 : index
    %11 = vector.load %arg6[%c0_10, %c0_11] : memref<16x128xf32, #tpu.memory_space<vmem>>, vector<16x128xf32>
    tpu.vector_store %arg6[%c0_10, %c0_11], %10 {strides = array<i32>} : memref<16x128xf32, #tpu.memory_space<vmem>>, vector<16x128xf32>,
    %c0_12 = arith.constant 0 : index
    %c0_13 = arith.constant 0 : index
    %12 = vector.load %arg7[%c0_12, %c0_13] : memref<16x128xf32, #tpu.memory_space<vmem>>, vector<16x128xf32>
    %13 = arith.addf %12, %4 : vector<16x128xf32>
    %c0_14 = arith.constant 0 : index
    %c0_15 = arith.constant 0 : index
    %14 = vector.load %arg7[%c0_14, %c0_15] : memref<16x128xf32, #tpu.memory_space<vmem>>, vector<16x128xf32>
    tpu.vector_store %arg7[%c0_14, %c0_15], %13 {strides = array<i32>} : memref<16x128xf32, #tpu.memory_space<vmem>>, vector<16x128xf32>,
    %c0_i32_16 = arith.constant 0 : i32
    %15 = arith.cmpi eq, %arg1, %c0_i32_16 : i32
    %16 = arith.extui %15 : i1 to i32
    %c0_i32_17 = arith.constant 0 : i32
    %17 = arith.cmpi ne, %16, %c0_i32_17 : i32
    scf.if %17 {
      %c0_18 = arith.constant 0 : index
      %c0_19 = arith.constant 0 : index
      %18 = vector.load %arg5[%c0_18, %c0_19] : memref<16x128xf32, #tpu.memory_space<vmem>>, vector<16x128xf32>
      %19 = vector.shape_cast %18 : vector<16x128xf32> to vector<1x16x128xf32>
      %cst = arith.constant dense<0.000000e+00> : vector<1xf32>
      %20 = vector.multi_reduction <add>, %19, %cst [1, 2] : vector<1x16x128xf32> to vector<1xf32>
      %21 = vector.shape_cast %20 : vector<1xf32> to vector<1x1x1xf32>
      %22 = vector.extract %21[0, 0, 0] : f32 from vector<1x1x1xf32>
      %c0_20 = arith.constant 0 : index
      %c0_21 = arith.constant 0 : index
      %23 = memref.load %arg4[%c0_20, %c0_21] : memref<1x3xf32, #tpu.memory_space<smem>>
      memref.store %22, %arg4[%c0_20, %c0_21] : memref<1x3xf32, #tpu.memory_space<smem>>
      %c0_22 = arith.constant 0 : index
      %c0_23 = arith.constant 0 : index
      %24 = vector.load %arg6[%c0_22, %c0_23] : memref<16x128xf32, #tpu.memory_space<vmem>>, vector<16x128xf32>
      %25 = vector.shape_cast %24 : vector<16x128xf32> to vector<1x16x128xf32>
      %cst_24 = arith.constant dense<0.000000e+00> : vector<1xf32>
      %26 = vector.multi_reduction <add>, %25, %cst_24 [1, 2] : vector<1x16x128xf32> to vector<1xf32>
      %27 = vector.shape_cast %26 : vector<1xf32> to vector<1x1x1xf32>
      %28 = vector.extract %27[0, 0, 0] : f32 from vector<1x1x1xf32>
      %c0_25 = arith.constant 0 : index
      %c1 = arith.constant 1 : index
      %29 = memref.load %arg4[%c0_25, %c1] : memref<1x3xf32, #tpu.memory_space<smem>>
      memref.store %28, %arg4[%c0_25, %c1] : memref<1x3xf32, #tpu.memory_space<smem>>
      %c0_26 = arith.constant 0 : index
      %c0_27 = arith.constant 0 : index
      %30 = vector.load %arg7[%c0_26, %c0_27] : memref<16x128xf32, #tpu.memory_space<vmem>>, vector<16x128xf32>
      %31 = vector.shape_cast %30 : vector<16x128xf32> to vector<1x16x128xf32>
      %cst_28 = arith.constant dense<0.000000e+00> : vector<1xf32>
      %32 = vector.multi_reduction <add>, %31, %cst_28 [1, 2] : vector<1x16x128xf32> to vector<1xf32>
      %33 = vector.shape_cast %32 : vector<1xf32> to vector<1x1x1xf32>
      %34 = vector.extract %33[0, 0, 0] : f32 from vector<1x1x1xf32>
      %c0_29 = arith.constant 0 : index
      %c2 = arith.constant 2 : index
      %35 = memref.load %arg4[%c0_29, %c2] : memref<1x3xf32, #tpu.memory_space<smem>>
      memref.store %34, %arg4[%c0_29, %c2] : memref<1x3xf32, #tpu.memory_space<smem>>
    } else {
    }
    return
  }
  func.func @transform_0(%arg0: i32, %arg1: i32) -> (i32, i32) {
    %c1_i32 = arith.constant 1 : i32
    %0 = arith.muli %arg0, %c1_i32 : i32
    %1 = arith.addi %0, %arg1 : i32
    %c0_i32 = arith.constant 0 : i32
    %c0_i32_0 = arith.constant 0 : i32
    return %1, %c0_i32 : i32, i32
  }
  func.func @transform_1(%arg0: i32, %arg1: i32) -> (i32, i32) {
    %c1_i32 = arith.constant 1 : i32
    %0 = arith.muli %arg0, %c1_i32 : i32
    %1 = arith.addi %0, %arg1 : i32
    %c0_i32 = arith.constant 0 : i32
    %c0_i32_0 = arith.constant 0 : i32
    return %1, %c0_i32 : i32, i32
  }
  func.func @transform_2(%arg0: i32, %arg1: i32) -> (i32, i32) {
    %c0_i32 = arith.constant 0 : i32
    %c0_i32_0 = arith.constant 0 : i32
    return %arg0, %c0_i32 : i32, i32
  }
}

</mosaic_0001>

<bundles_post_ra>
// kernel: tpu_custom_call.1
= control target key start
LH: loop header
LB: loop body
LE: loop exit
PB: predicated region body
PF: predicated region fallthrough
CT: control target
= control target key end

     0   :  { %7 = vsyncpa [#allocation6], 0  ;;  %s273_s0 = inlined_call_operand.hbm [shape: f32[16,128], index: 0, kind: input, shape index: {}]   ;;  %s274_s1 = inlined_call_operand.hbm [shape: f32[16,128], index: 1, kind: input, shape index: {}]   ;;  %s275_s2 = inlined_call_operand.hbm [shape: f32[1,3], index: 2, kind: output, shape index: {}]  }
   0x1   :  { %8 = vsyncpa [#allocation9], 0 }
   0x2   :  { %9 = vsyncpa [#allocation7], 0  ;;  %s217_s9 = smov [#allocation5]   ;;  %s157_s13 = scalar_lea.hbm %s273_s0, 256 }
   0x3   :  { %s19_s10 = sshll.u32 %s217_s9, 4  ;;  %p158_p0 = scmp.ne.s32.totalorder %s273_s0, %s157_s13  ;;  %s20_s10 = int_to_ptr.vmem [resolvable:$true] %s19_s10 }
   0x4   :  { %p161_p1 = scmp.lt.u32.totalorder %s157_s13, %s273_s0 }
   0x6   :  { %p163_p2 = pnand %p161_p1, %p158_p0 }
   0x8   :  { %166 = shalt.err (!%p163_p2)
}
   0x9   :  { %s167_s18 = scalar_lea.vmem %s20_s10, 256  ;;  %p172_p4 = scmp.lt.s32.totalorder %s20_s10, %s20_s10 }
   0xa   :  { %p168_p3 = scmp.ne.s32.totalorder %s20_s10, %s167_s18  ;;  %p173_p5 = scmp.lt.s32.totalorder %s167_s18, %s167_s18 }
   0xc   :  { %p174_p6 = por %p173_p5, %p172_p4 }
   0xe   :  { %p175_p7 = pnand %p174_p6, %p168_p3 }
  0x10   :  { %178 = shalt.err (!%p175_p7)
}
  0x11   :  { %s218_s19 = smov 128   ;;  %s219_s20 = smov 8  }
  0x12   :  { %25 = dma.hbm_to_vmem [thread:$0]  %s273_s0, 256, %s20_s10, [#allocation6], %s218_s19, %s218_s19, %s219_s20  }
  0x13   :  { %s220_s23 = smov [#allocation8]   ;;  %s179_s27 = scalar_lea.hbm %s274_s1, 256 }
  0x14   :  { %s35_s24 = sshll.u32 %s220_s23, 4  ;;  %p180_p8 = scmp.ne.s32.totalorder %s274_s1, %s179_s27  ;;  %s36_s24 = int_to_ptr.vmem [resolvable:$true] %s35_s24 }
  0x15   :  { %p183_p9 = scmp.lt.u32.totalorder %s179_s27, %s274_s1 }
  0x17   :  { %p185_p10 = pnand %p183_p9, %p180_p8 }
  0x19   :  { %188 = shalt.err (!%p185_p10)
}
  0x1a   :  { %s189_s4 = scalar_lea.vmem %s36_s24, 256  ;;  %p194_p12 = scmp.lt.s32.totalorder %s36_s24, %s36_s24 }
  0x1b   :  { %p190_p11 = scmp.ne.s32.totalorder %s36_s24, %s189_s4  ;;  %p195_p13 = scmp.lt.s32.totalorder %s189_s4, %s189_s4 }
  0x1d   :  { %p196_p0 = por %p195_p13, %p194_p12 }
  0x1f   :  { %p197_p1 = pnand %p196_p0, %p190_p11 }
  0x21   :  { %200 = shalt.err (!%p197_p1)
}
  0x22   :  { %41 = dma.hbm_to_vmem [thread:$0]  %s274_s1, 256, %s36_s24, [#allocation9], %s218_s19, %s218_s19, %s219_s20  }
  0x23   :  { %211 = dma.done.wait [#allocation6], 256  }
  0x24   :  { %212 = vsyncadd [#allocation6], 4294967040 }
  0x25   :  { %213 = dma.done.wait [#allocation9], 256  }
  0x26   :  { %214 = vsyncadd [#allocation9], 4294967040  ;;  %v64_v0 = vld [vmem:[#allocation8] sm:$0xff]  ;;  %v65_v1 = vld [vmem:[#allocation8 + $0x8] sm:$0xff]  ;;  %s201_s10 = scalar_lea.hbm %s275_s2, 16 }
  0x27   :  { %v62_v2 = vld [vmem:[#allocation5] sm:$0xff]  ;;  %v119_v3 = vadd.f32 %v65_v1, %v64_v0  ;;  %v63_v4 = vld [vmem:[#allocation5 + $0x8] sm:$0xff]  ;;  %p202_p2 = scmp.ne.s32.totalorder %s275_s2, %s201_s10  ;;  %p205_p3 = scmp.lt.u32.totalorder %s201_s10, %s275_s2 }
  0x28   :  { %v68_v5 = vmul.f32 %v64_v0, %v62_v2  ;;  %v69_v6 = vmul.f32 %v65_v1, %v63_v4  ;;  %v105_v8 = vadd.f32 %v63_v4, %v62_v2 }
  0x29   :  { %120 = vadd.xlane.f32.xlu1 %v119_v3  ;;  %p207_p4 = pnand %p205_p3, %p202_p2 }
  0x2a   :  { %v91_v7 = vadd.f32 %v69_v6, %v68_v5 }
  0x2c   :  { %92 = vadd.xlane.f32.xlu0 %v91_v7 }
  0x30   :  { %106 = vadd.xlane.f32.xlu0 %v105_v8 }
  0xb6   :  { %v121_v9 = vpop.xlane.xlu1 %120 }
  0xb7   :  { %v122_v10 = vrot.slane %v121_v9, 4 }
  0xb9   :  { %v123_v11 = vadd.f32 %v122_v10, %v121_v9  ;;  %v93_v12 = vpop.xlane.xlu0 %92 }
  0xba   :  { %v94_v13 = vrot.slane %v93_v12, 4 }
  0xbb   :  { %v124_v15 = vrot.slane %v123_v11, 2 }
  0xbc   :  { %v95_v14 = vadd.f32 %v94_v13, %v93_v12 }
  0xbd   :  { %v107_v16 = vpop.xlane.xlu0 %106  ;;  %v125_v21 = vadd.f32 %v124_v15, %v123_v11 }
  0xbe   :  { %v96_v17 = vrot.slane %v95_v14, 2  ;;  %v108_v18 = vrot.slane %v107_v16, 4 }
  0xbf   :  { %v126_v26 = vrot.slane %v125_v21, 1 }
  0xc0   :  { %v109_v19 = vadd.f32 %v108_v18, %v107_v16  ;;  %v97_v20 = vadd.f32 %v96_v17, %v95_v14 }
  0xc1   :  { %v127_v29 = vadd.f32 %v126_v26, %v125_v21 }
  0xc2   :  { %v110_v22 = vrot.slane %v109_v19, 2  ;;  %v98_v23 = vrot.slane %v97_v20, 1 }
  0xc4   :  { %v111_v24 = vadd.f32 %v110_v22, %v109_v19  ;;  %v99_v25 = vadd.f32 %v98_v23, %v97_v20 }
  0xc6   :  { %146 = vpush %v99_v25  ;;  %v112_v27 = vrot.slane %v111_v24, 1 }
  0xc8   :  { %v113_v28 = vadd.f32 %v112_v27, %v111_v24 }
  0xca   :  { %148 = vpush %v113_v28 }
  0xcb   :  { %150 = vpush %v127_v29 }
  0xf7   :  { %s147_s1 = spop %146 }
  0xf8   :  { %102 = sst [smem:[#allocation10]] %s147_s1 }
  0xfb   :  { %s149_s6 = spop %148 }
  0xfc   :  { %116 = sst [smem:[#allocation10 + $0x1]] %s149_s6  ;;  %s151_s7 = spop %150 }
  0xfd   :  { %130 = sst [smem:[#allocation10 + $0x2]] %s151_s7 }
  0xfe   :  { %210 = shalt.err (!%p207_p4)
}
  0xff   :  { %s221_s15 = smov [#allocation10]  }
 0x100   :  { %138 = dma.smem_to_hbm %s221_s15, 16, %s275_s2, [#allocation7]  }
 0x101   :  { %215 = dma.done.wait [#allocation7], 16  }
 0x102   :  { %216 = vsyncadd [#allocation7], 4294967280 }
 0x103   :  { %142 = sfence }
 0x104   :  { %143 = vsyncpa [#allocation6], 1 }
 0x105   :  { %144 = vsyncpa [#allocation9], 1 }
 0x106   :  { %145 = vsyncpa [#allocation7], 1 }

</bundles_post_ra>
